<compile_context>
chip_gen: v7x
topology: tpu7x:2x2x1
jax: 0.10.0
libtpu: 0.0.40
codegen_flags: <defaults>
</compile_context>

<pallas_src>
import functools
import math

import jax
import jax.numpy as jnp
from jax.experimental import pallas as pl
from jax.experimental.pallas import tpu as pltpu


# ----------------------------------------------------------------------------
# Kernels
# ----------------------------------------------------------------------------
def _layernorm_kernel(x_ref, w_ref, b_ref, o_ref, *, eps, hidden, bf16_epilogue):
    # x_ref: (TR, H) tile; w_ref / b_ref: (1, H); o_ref: (TR, H)
    x_nat = x_ref[...]
    x = x_nat.astype(jnp.float32)
    inv_h = jnp.float32(1.0 / hidden)

    # Two-pass mean/variance, all stats in f32 (matches the two-pass PyTorch
    # reference; avoids the E[x^2]-mean^2 cancellation issue).  The (x - mean)
    # term is reused below, so this is no more VALU work than single-pass.
    mean = jnp.sum(x, axis=-1, keepdims=True) * inv_h
    d = x - mean
    var = jnp.sum(d * d, axis=-1, keepdims=True) * inv_h
    inv = jax.lax.rsqrt(var + jnp.float32(eps))

    # NOTE: the masked partial last block may compute on garbage rows; outputs
    # there are never stored (functionally correct), but could trip NaN traps.
    if bf16_epilogue:
        # Packed bf16 normalize/affine: per-row scalars downcast once (O(TR)),
        # per-element stage runs 2 elems/lane on the VPU.  w/b arrive as bf16.
        ed = o_ref.dtype
        y = (x_nat - mean.astype(ed)) * inv.astype(ed)
        o_ref[...] = w_ref[...] * y + b_ref[...]
    else:
        y = d * inv
        o_ref[...] = (w_ref[...] * y + b_ref[...]).astype(o_ref.dtype)


def _layernorm_folded_kernel(x_ref, w_ref, b_ref, seg_ref, segt_ref, o_ref,
                             *, eps, hidden):
    # x_ref: (TR, F*H) — each lane-dense row packs F independent logical rows,
    # so loads/stores avoid masked vst.msk partial stores when hidden < 128.
    # seg_ref: (F*H, F) block-diagonal 0/1; segt_ref: (F, F*H) its transpose.
    x = x_ref[...].astype(jnp.float32)
    seg = seg_ref[...]
    segt = segt_ref[...]
    inv_h = jnp.float32(1.0 / hidden)

    # Segmented row reductions / broadcasts on the otherwise-idle MXU.
    mean = jnp.dot(x, seg, preferred_element_type=jnp.float32) * inv_h       # (TR, F)
    mean_b = jnp.dot(mean, segt, preferred_element_type=jnp.float32)         # (TR, F*H)
    d = x - mean_b
    var = jnp.dot(d * d, seg, preferred_element_type=jnp.float32) * inv_h    # (TR, F)
    inv = jax.lax.rsqrt(var + jnp.float32(eps))
    inv_b = jnp.dot(inv, segt, preferred_element_type=jnp.float32)           # (TR, F*H)

    y = d * inv_b
    o_ref[...] = (w_ref[...] * y + b_ref[...]).astype(o_ref.dtype)


# ----------------------------------------------------------------------------
# Chip query / tile selection
# ----------------------------------------------------------------------------
def _chip_info():
    """Returns (vmem_capacity_bytes, num_tensorcores_per_chip)."""
    vmem_cap = 64 * 1024 * 1024   # conservative default (v7x per-TC VMEM)
    num_tc = 1
    try:
        info = pltpu.get_tpu_info()
        vmem_cap = int(info.vmem_capacity_bytes)
    except Exception:
        pass
    try:
        kind = jax.devices()[0].device_kind.lower()
    except Exception:
        kind = ""
    if "v7" in kind or "7x" in kind:
        num_tc = 2
        vmem_cap = min(vmem_cap, 64 * 1024 * 1024)  # per-TC VMEM on v7x
    return vmem_cap, num_tc


def _pick_row_tile(rows_k, width, itemsize, row_tile):
    vmem_cap, num_tc = _chip_info()
    # Sublane packing: rows per tile multiple of 8 (f32) / 16 (bf16) / 32 (i8).
    row_mult = max(8, 32 // itemsize)

    # VMEM footprint per tile row: double-buffered in + out blocks in the I/O
    # dtype plus ~3 live f32 intermediates (x32, d, d*d / y) of scratch.
    per_row_bytes = width * (4 * itemsize + 12)
    tile_budget = vmem_cap // 2
    tr_cap = max(row_mult, tile_budget // per_row_bytes)

    # Bytes-based default tile (~6 MiB per-step DMA keeps every hidden size on
    # the ~85% point of the measured tile-size/roofline curve).
    target_block_bytes = 6 * 1024 * 1024
    if row_tile is not None:
        desired = row_tile
    else:
        desired = max(row_mult, target_block_bytes // (width * itemsize))

    tr = min(desired, tr_cap)
    tr = max(row_mult, (tr // row_mult) * row_mult)

    # Only split the row grid for megacore sharding on chips with 2 TCs (v7x);
    # on v5e/v6e the extra grid step is pure overhead.
    if num_tc >= 2:
        half = (rows_k // (2 * row_mult)) * row_mult
        if half >= row_mult:
            tr = min(tr, half)

    # Small inputs: one block covering everything (full dims is always legal).
    if rows_k <= tr:
        tr = rows_k

    vmem_limit = int(min(vmem_cap - 8 * 1024 * 1024,
                         tile_budget + tile_budget // 2))
    return tr, vmem_limit
    # TODO(synk): sweep pipeline_mode=pl.Buffered(3) on the x BlockSpec for
    # v5e (DMA-bound, 128 MiB VMEM makes the extra buffer cheap).


# ----------------------------------------------------------------------------
# Wrapper
# ----------------------------------------------------------------------------
def bert_layer_norm(x, weight, bias, eps=1e-12, row_tile=None):
    """LayerNorm over the last axis of x, matching BertLayerNorm.forward."""
    orig_shape = x.shape
    hidden = orig_shape[-1]
    rows = math.prod(orig_shape[:-1])
    if rows == 0 or hidden == 0:
        return x

    itemsize = jnp.dtype(x.dtype).itemsize
    x2 = x.reshape(rows, hidden)

    # ---- narrow-hidden fallback: fold rows into the lane axis --------------
    use_fold = False
    fold = 1
    if hidden < 128 and hidden % 128 != 0:
        fold = math.lcm(hidden, 128) // hidden
        use_fold = fold <= 64  # keep the folded width / row padding sane
    # TODO(synk): hidden >= 128 but not a multiple of 128 still uses masked
    # trailing-lane stores; fold/pad could be extended there too.

    if use_fold:
        width = fold * hidden
        rows_pad = ((rows + fold - 1) // fold) * fold
        if rows_pad != rows:
            x2 = jnp.concatenate(
                [x2, jnp.zeros((rows_pad - rows, hidden), x.dtype)], axis=0)
        rows_k = rows_pad // fold
        x2 = x2.reshape(rows_k, width)

        w2 = jnp.tile(weight.reshape(-1), fold).reshape(1, width).astype(jnp.float32)
        b2 = jnp.tile(bias.reshape(-1), fold).reshape(1, width).astype(jnp.float32)
        col = jnp.arange(width, dtype=jnp.int32) // hidden
        seg_ids = jnp.arange(fold, dtype=jnp.int32)
        seg = (col[:, None] == seg_ids[None, :]).astype(jnp.float32)   # (W, F)
        segt = (seg_ids[:, None] == col[None, :]).astype(jnp.float32)  # (F, W)

        tr, vmem_limit = _pick_row_tile(rows_k, width, itemsize, row_tile)
        grid = (pl.cdiv(rows_k, tr),)

        kernel = functools.partial(_layernorm_folded_kernel,
                                   eps=float(eps), hidden=hidden)
        out = pl.pallas_call(
            kernel,
            out_shape=jax.ShapeDtypeStruct((rows_k, width), x.dtype),
            grid_spec=pltpu.PrefetchScalarGridSpec(
                num_scalar_prefetch=0,
                grid=grid,
                in_specs=[
                    pl.BlockSpec((tr, width), lambda i: (i, 0)),
                    pl.BlockSpec((1, width), lambda i: (0, 0)),
                    pl.BlockSpec((1, width), lambda i: (0, 0)),
                    pl.BlockSpec((width, fold), lambda i: (0, 0)),
                    pl.BlockSpec((fold, width), lambda i: (0, 0)),
                ],
                out_specs=pl.BlockSpec((tr, width), lambda i: (i, 0)),
            ),
            compiler_params=pltpu.CompilerParams(
                dimension_semantics=("parallel",),
                vmem_limit_bytes=vmem_limit,
            ),
        )(x2, w2, b2, seg, segt)
        out = out.reshape(rows_pad, hidden)[:rows]
        return out.reshape(orig_shape)

    # ---- main path (hidden is lane-dense or >= 128) --------------------------
    bf16_epilogue = (x.dtype == jnp.bfloat16)
    param_dtype = jnp.bfloat16 if bf16_epilogue else jnp.float32
    # Grid-invariant params: cast once here instead of every grid step.
    w2 = weight.reshape(1, hidden).astype(param_dtype)
    b2 = bias.reshape(1, hidden).astype(param_dtype)

    tr, vmem_limit = _pick_row_tile(rows, hidden, itemsize, row_tile)
    grid = (pl.cdiv(rows, tr),)  # partial last block handled/masked by Pallas

    kernel = functools.partial(_layernorm_kernel, eps=float(eps),
                               hidden=hidden, bf16_epilogue=bf16_epilogue)
    out = pl.pallas_call(
        kernel,
        out_shape=jax.ShapeDtypeStruct((rows, hidden), x.dtype),
        grid_spec=pltpu.PrefetchScalarGridSpec(
            num_scalar_prefetch=0,
            grid=grid,
            in_specs=[
                pl.BlockSpec((tr, hidden), lambda i: (i, 0)),
                pl.BlockSpec((1, hidden), lambda i: (0, 0)),
                pl.BlockSpec((1, hidden), lambda i: (0, 0)),
            ],
            out_specs=pl.BlockSpec((tr, hidden), lambda i: (i, 0)),
        ),
        compiler_params=pltpu.CompilerParams(
            dimension_semantics=("parallel",),
            vmem_limit_bytes=vmem_limit,
        ),
    )(x2, w2, b2)
    return out.reshape(orig_shape)


if __name__ == "__main__":
    key = jax.random.PRNGKey(0)
    batch, seq, hidden = 2, 8, 32

    x = jax.random.normal(key, (batch, seq, hidden), dtype=jnp.float32)
    # Deterministic parameter init matching nn.Parameter(torch.ones/zeros(hidden)).
    weight = jnp.ones((hidden,), dtype=jnp.float32)
    bias = jnp.zeros((hidden,), dtype=jnp.float32)

    out = bert_layer_norm(x, weight, bias, eps=1e-12)
    out = jax.block_until_ready(out)

    # Reference check in plain JAX (same math as the PyTorch forward).
    u = jnp.mean(x, axis=-1, keepdims=True)
    s = jnp.mean((x - u) ** 2, axis=-1, keepdims=True)
    ref = weight * ((x - u) / jnp.sqrt(s + 1e-12)) + bias
    assert jnp.allclose(out, ref, atol=1e-5, rtol=1e-5), "mismatch vs reference"

    print("KERNEL_OK")
</pallas_src>

<mosaic_0001>
module attributes {stable_mosaic.version = 11 : i64} {
  func.func @_layernorm_folded_kernel(%arg0: i32, %arg1: memref<4x128xf32, #tpu.memory_space<vmem>>, %arg2: memref<1x128xf32, #tpu.memory_space<vmem>>, %arg3: memref<1x128xf32, #tpu.memory_space<vmem>>, %arg4: memref<128x4xf32, #tpu.memory_space<vmem>>, %arg5: memref<4x128xf32, #tpu.memory_space<vmem>>, %arg6: memref<4x128xf32, #tpu.memory_space<vmem>>) attributes {dimension_semantics = [#tpu.dimension_semantics<parallel>], iteration_bounds = array<i64: 1>, scalar_prefetch = 0 : i64, scratch_operands = 0 : i64, tpu.core_type = #tpu.core_type<tc>, window_params = [{transform_indices = @transform_0, window_bounds = array<i64: 4, 128>}, {pipeline_mode = #tpu.pipeline_mode<synchronous>, transform_indices = @transform_1, window_bounds = array<i64: 1, 128>}, {pipeline_mode = #tpu.pipeline_mode<synchronous>, transform_indices = @transform_2, window_bounds = array<i64: 1, 128>}, {pipeline_mode = #tpu.pipeline_mode<synchronous>, transform_indices = @transform_3, window_bounds = array<i64: 128, 4>}, {pipeline_mode = #tpu.pipeline_mode<synchronous>, transform_indices = @transform_4, window_bounds = array<i64: 4, 128>}, {transform_indices = @transform_5, window_bounds = array<i64: 4, 128>}]} {
    %c0 = arith.constant 0 : index
    %c0_0 = arith.constant 0 : index
    %0 = vector.load %arg1[%c0, %c0_0] : memref<4x128xf32, #tpu.memory_space<vmem>>, vector<4x128xf32>
    %c0_1 = arith.constant 0 : index
    %c0_2 = arith.constant 0 : index
    %1 = vector.load %arg4[%c0_1, %c0_2] : memref<128x4xf32, #tpu.memory_space<vmem>>, vector<128x4xf32>
    %c0_3 = arith.constant 0 : index
    %c0_4 = arith.constant 0 : index
    %2 = vector.load %arg5[%c0_3, %c0_4] : memref<4x128xf32, #tpu.memory_space<vmem>>, vector<4x128xf32>
    %cst = arith.constant dense<0.000000e+00> : vector<4x4xf32>
    %3 = tpu.matmul %0, %1, %cst {dimension_numbers = #tpu.dot_dimension_numbers<[1], [0], [0], [1], [0, 0, 1, 1], [], []>} : vector<4x128xf32>, vector<128x4xf32>, vector<4x4xf32> -> vector<4x4xf32>
    %cst_5 = arith.constant 3.125000e-02 : f32
    %4 = vector.broadcast %cst_5 : f32 to vector<4x4xf32>
    %5 = arith.mulf %3, %4 : vector<4x4xf32>
    %cst_6 = arith.constant dense<0.000000e+00> : vector<4x128xf32>
    %6 = tpu.matmul %5, %2, %cst_6 {dimension_numbers = #tpu.dot_dimension_numbers<[1], [0], [0], [1], [0, 0, 1, 1], [], []>} : vector<4x4xf32>, vector<4x128xf32>, vector<4x128xf32> -> vector<4x128xf32>
    %7 = arith.subf %0, %6 : vector<4x128xf32>
    %8 = arith.mulf %7, %7 : vector<4x128xf32>
    %cst_7 = arith.constant dense<0.000000e+00> : vector<4x4xf32>
    %9 = tpu.matmul %8, %1, %cst_7 {dimension_numbers = #tpu.dot_dimension_numbers<[1], [0], [0], [1], [0, 0, 1, 1], [], []>} : vector<4x128xf32>, vector<128x4xf32>, vector<4x4xf32> -> vector<4x4xf32>
    %cst_8 = arith.constant 3.125000e-02 : f32
    %10 = vector.broadcast %cst_8 : f32 to vector<4x4xf32>
    %11 = arith.mulf %9, %10 : vector<4x4xf32>
    %cst_9 = arith.constant 9.99999996E-13 : f32
    %12 = vector.broadcast %cst_9 : f32 to vector<4x4xf32>
    %13 = arith.addf %11, %12 : vector<4x4xf32>
    %14 = math.rsqrt %13 : vector<4x4xf32>
    %cst_10 = arith.constant dense<0.000000e+00> : vector<4x128xf32>
    %15 = tpu.matmul %14, %2, %cst_10 {dimension_numbers = #tpu.dot_dimension_numbers<[1], [0], [0], [1], [0, 0, 1, 1], [], []>} : vector<4x4xf32>, vector<4x128xf32>, vector<4x128xf32> -> vector<4x128xf32>
    %16 = arith.mulf %7, %15 : vector<4x128xf32>
    %c0_11 = arith.constant 0 : index
    %c0_12 = arith.constant 0 : index
    %17 = vector.load %arg2[%c0_11, %c0_12] : memref<1x128xf32, #tpu.memory_space<vmem>>, vector<1x128xf32>
    %18 = vector.broadcast %17 : vector<1x128xf32> to vector<4x128xf32>
    %19 = arith.mulf %18, %16 : vector<4x128xf32>
    %c0_13 = arith.constant 0 : index
    %c0_14 = arith.constant 0 : index
    %20 = vector.load %arg3[%c0_13, %c0_14] : memref<1x128xf32, #tpu.memory_space<vmem>>, vector<1x128xf32>
    %21 = vector.broadcast %20 : vector<1x128xf32> to vector<4x128xf32>
    %22 = arith.addf %19, %21 : vector<4x128xf32>
    %c0_15 = arith.constant 0 : index
    %c0_16 = arith.constant 0 : index
    %23 = vector.load %arg6[%c0_15, %c0_16] : memref<4x128xf32, #tpu.memory_space<vmem>>, vector<4x128xf32>
    tpu.vector_store %arg6[%c0_15, %c0_16], %22 {strides = array<i32>} : memref<4x128xf32, #tpu.memory_space<vmem>>, vector<4x128xf32>,
    return
  }
  func.func @transform_0(%arg0: i32) -> (i32, i32) {
    %c0_i32 = arith.constant 0 : i32
    %c0_i32_0 = arith.constant 0 : i32
    return %arg0, %c0_i32 : i32, i32
  }
  func.func @transform_1(%arg0: i32) -> (i32, i32) {
    %c0_i32 = arith.constant 0 : i32
    %c0_i32_0 = arith.constant 0 : i32
    %c0_i32_1 = arith.constant 0 : i32
    return %c0_i32, %c0_i32_0 : i32, i32
  }
  func.func @transform_2(%arg0: i32) -> (i32, i32) {
    %c0_i32 = arith.constant 0 : i32
    %c0_i32_0 = arith.constant 0 : i32
    %c0_i32_1 = arith.constant 0 : i32
    return %c0_i32, %c0_i32_0 : i32, i32
  }
  func.func @transform_3(%arg0: i32) -> (i32, i32) {
    %c0_i32 = arith.constant 0 : i32
    %c0_i32_0 = arith.constant 0 : i32
    %c0_i32_1 = arith.constant 0 : i32
    return %c0_i32, %c0_i32_0 : i32, i32
  }
  func.func @transform_4(%arg0: i32) -> (i32, i32) {
    %c0_i32 = arith.constant 0 : i32
    %c0_i32_0 = arith.constant 0 : i32
    %c0_i32_1 = arith.constant 0 : i32
    return %c0_i32, %c0_i32_0 : i32, i32
  }
  func.func @transform_5(%arg0: i32) -> (i32, i32) {
    %c0_i32 = arith.constant 0 : i32
    %c0_i32_0 = arith.constant 0 : i32
    return %arg0, %c0_i32 : i32, i32
  }
}

</mosaic_0001>

<bundles_post_ra>
// kernel: tpu_custom_call.1
= control target key start
LH: loop header
LB: loop body
LE: loop exit
PB: predicated region body
PF: predicated region fallthrough
CT: control target
= control target key end

     0   :  { %v570_v3 = vmov 0.0|0.0   ;;  %vm571_vm0 = vmmov 0   ;;  %v572_v6 = vmov 0.0   ;;  %s698_s0 = inlined_call_operand.vmem [shape: f32[4,128], index: 0, kind: input, shape index: {}]   ;;  %s699_s1 = inlined_call_operand.vmem [shape: f32[1,128], index: 1, kind: input, shape index: {}]   ;;  %s700_s2 = inlined_call_operand.vmem [shape: f32[1,128], index: 2, kind: input, shape index: {}]   ;;  %s701_s3 = inlined_call_operand.vmem [shape: f32[128,4], index: 3, kind: input, shape index: {}]   ;;  %s702_s4 = inlined_call_operand.vmem [shape: f32[4,128], index: 4, kind: input, shape index: {}]   ;;  %s703_s5 = inlined_call_operand.hbm [shape: f32[4,128], index: 5, kind: output, shape index: {}]  }
   0x1   :  { %v22_v0 = vld [vmem:[%s701_s3] sm:$0xff]  ;;  %v23_v1 = vld [vmem:[%s701_s3 + $0x8] sm:$0xff]  ;;  %v24_v2 = vld [vmem:[%s701_s3 + $0x10] sm:$0xff]  ;;  %492 = vmatprep.subr.bf16.mxu0 %v570_v3  ;;  %444 = vmatprep.mubr.msk.f32.mxu0 %vm571_vm0, %v572_v6 }
   0x2   :  { %v493_v4 = vpack.c.bf16 %v23_v1, %v22_v0  ;;  %v25_v5 = vld [vmem:[%s701_s3 + $0x18] sm:$0xff]  ;;  %447 = vmatprep.subr.mxu1 %v572_v6  ;;  %449 = vmatprep.mubr.msk.f32.mxu1 %vm571_vm0, %v572_v6  ;;  %v26_v8 = vld [vmem:[%s701_s3 + $0x20] sm:$0xff]  ;;  %v27_v9 = vld [vmem:[%s701_s3 + $0x28] sm:$0xff] }
   0x3   :  { %v496_v7 = vpack.c.bf16 %v25_v5, %v24_v2 }
   0x4   :  { %494 = vmatpush3.bf16.msra.mxu0 %v493_v4 }
   0x5   :  { %495 = vmatprep.subr.bf16.mxu0 %v570_v3 }
   0x6   :  { %10 = vsyncpa [#allocation3], 0  ;;  %v499_v10 = vpack.c.bf16 %v27_v9, %v26_v8  ;;  %v28_v11 = vld [vmem:[%s701_s3 + $0x30] sm:$0xff]  ;;  %v29_v12 = vld [vmem:[%s701_s3 + $0x38] sm:$0xff]  ;;  %vm114_vm1 = vcmask 1043456   ;;  %vm110_vm2 = vcmask 31744  }
   0x7   :  { %v502_v13 = vpack.c.bf16 %v29_v12, %v28_v11  ;;  %v30_v14 = vld [vmem:[%s701_s3 + $0x40] sm:$0xff]  ;;  %v31_v15 = vld [vmem:[%s701_s3 + $0x48] sm:$0xff]  ;;  %v32_v17 = vld [vmem:[%s701_s3 + $0x50] sm:$0xff]  ;;  %s573_s30 = smov [#allocation2]  }
   0x8   :  { %497 = vmatpush3.bf16.msra.mxu0 %v496_v7  ;;  %v505_v16 = vpack.c.bf16 %v31_v15, %v30_v14  ;;  %v33_v18 = vld [vmem:[%s701_s3 + $0x58] sm:$0xff]  ;;  %v34_v20 = vld [vmem:[%s701_s3 + $0x60] sm:$0xff]  ;;  %v35_v21 = vld [vmem:[%s701_s3 + $0x68] sm:$0xff]  ;;  %s360_s6 = sshll.u32 %s573_s30, 4  ;;  %s361_s6 = int_to_ptr.vmem [resolvable:$true] %s360_s6 }
   0x9   :  { %498 = vmatprep.subr.bf16.mxu0 %v570_v3  ;;  %v508_v19 = vpack.c.bf16 %v33_v18, %v32_v17  ;;  %v511_v22 = vpack.c.bf16 %v35_v21, %v34_v20  ;;  %v36_v23 = vld [vmem:[%s701_s3 + $0x70] sm:$0xff]  ;;  %v37_v24 = vld [vmem:[%s701_s3 + $0x78] sm:$0xff]  ;;  %v21_v26 = vld [vmem:[%s698_s0] sm:$0xf]  ;;  %s546_s7 = scalar_lea.vmem %s361_s6, 64  ;;  %p551_p1 = scmp.lt.s32.totalorder %s361_s6, %s361_s6 }
   0xa   :  { %v514_v25 = vpack.c.bf16 %v37_v24, %v36_v23  ;;  %v38_v27 = vld [vmem:[%s702_s4] sm:$0xf]  ;;  %p547_p0 = scmp.ne.s32.totalorder %s361_s6, %s546_s7  ;;  %p552_p2 = scmp.lt.s32.totalorder %s546_s7, %s546_s7 }
   0xb   :  { %448 = vmatpush3.msk.msra.mxu1 %vm114_vm1, %v38_v27  ;;  %v372_v41 = vld [vmem:[%s699_s1] ss:$0 sm:$0xff] }
   0xc   :  { %500 = vmatpush3.bf16.msra.mxu0 %v499_v10  ;;  %516 = vmatprep.subr.bf16.mxu1 %v570_v3  ;;  %v373_v44 = vld [vmem:[%s700_s2] ss:$0 sm:$0xff]  ;;  %p553_p3 = por %p552_p2, %p551_p1 }
   0xd   :  { %501 = vmatprep.subr.bf16.mxu0 %v570_v3 }
   0xe   :  { %p554_p4 = pnand %p553_p3, %p547_p0 }
  0x10   :  { %503 = vmatpush3.bf16.msra.mxu0 %v502_v13 }
  0x11   :  { %504 = vmatprep.subr.bf16.mxu0 %v570_v3 }
  0x14   :  { %506 = vmatpush3.bf16.msra.mxu0 %v505_v16 }
  0x15   :  { %507 = vmatprep.subr.bf16.mxu0 %v570_v3 }
  0x18   :  { %509 = vmatpush3.bf16.msra.mxu0 %v508_v19 }
  0x19   :  { %510 = vmatprep.subr.bf16.mxu0 %v570_v3 }
  0x1c   :  { %512 = vmatpush3.bf16.msra.mxu0 %v511_v22 }
  0x1d   :  { %513 = vmatprep.subr.bf16.mxu0 %v570_v3 }
  0x20   :  { %515 = vmatpush3.bf16.msra.mxu0 %v514_v25 }
  0x21   :  { %487 = vmatprep.subr.mxu0 %v572_v6 }
  0x23   :  { %445 = vmatmul.mubr.f32.vlgmr.msra.gmra.mrb[0].mxu0 %v21_v26 }
  0x24   :  { %489 = vmatprep.mubr.msk.f32.mxu0 %vm571_vm0, %v572_v6  ;;  %488 = vmatpush3.msk.msra.mxu0 %vm114_vm1, %v38_v27 }
  0xf6   :  { %v105_v28 = vpop.f32.mrb[0].mxu0 }
  0xf7   :  { %v109_v29 = vmul.f32 0.03125, %v105_v28  ;;  %v446_v30 = vpop.f32.mrb[1].mxu0 }
  0xf9   :  { %450 = vmatmul.mubr.msk.f32.vlgmr.msra.gmra.mrb[0].mxu1 %vm110_vm2, %v109_v29 }
  0xfa   :  { %518 = vmatpush3.bf16.msra.mxu1 %v493_v4  ;;  %484 = vmatprep.mubr.msk.f32.mxu1 %vm571_vm0, %v572_v6 }
  0xfb   :  { %519 = vmatprep.subr.bf16.mxu1 %v570_v3 }
  0xfe   :  { %521 = vmatpush3.bf16.msra.mxu1 %v496_v7 }
  0xff   :  { %522 = vmatprep.subr.bf16.mxu1 %v570_v3 }
 0x102   :  { %524 = vmatpush3.bf16.msra.mxu1 %v499_v10 }
 0x103   :  { %525 = vmatprep.subr.bf16.mxu1 %v570_v3 }
 0x106   :  { %527 = vmatpush3.bf16.msra.mxu1 %v502_v13 }
 0x107   :  { %528 = vmatprep.subr.bf16.mxu1 %v570_v3 }
 0x10a   :  { %530 = vmatpush3.bf16.msra.mxu1 %v505_v16 }
 0x10b   :  { %531 = vmatprep.subr.bf16.mxu1 %v570_v3 }
 0x10e   :  { %533 = vmatpush3.bf16.msra.mxu1 %v508_v19 }
 0x10f   :  { %534 = vmatprep.subr.bf16.mxu1 %v570_v3 }
 0x112   :  { %536 = vmatpush3.bf16.msra.mxu1 %v511_v22 }
 0x113   :  { %537 = vmatprep.subr.bf16.mxu1 %v570_v3 }
 0x116   :  { %539 = vmatpush3.bf16.msra.mxu1 %v514_v25 }
 0x1cc   :  { %v184_v31 = vpop.f32.mrb[0].mxu1 }
 0x1cd   :  { %v188_v32 = vsub.f32 %v21_v26, %v184_v31  ;;  %v451_v33 = vpop.f32.mrb[1].mxu1 }
 0x1cf   :  { %v189_v34 = vmul.f32 %v188_v32, %v188_v32 }
 0x1d1   :  { %485 = vmatmul.mubr.f32.vlgmr.msra.gmra.mrb[2].mxu1 %v189_v34 }
 0x2a4   :  { %v256_v35 = vpop.f32.mrb[2].mxu1 }
 0x2a5   :  { %v260_v36 = vmul.f32 0.03125, %v256_v35  ;;  %v486_v37 = vpop.f32.mrb[3].mxu1 }
 0x2a7   :  { %v261_v38 = vadd.f32 1e-12, %v260_v36 }
 0x2a9   :  { %544 = vrsqrt.f32 %v261_v38 }
 0x2b3   :  { %v545_v39 = vpop.eup %544 }
 0x2b4   :  { %490 = vmatmul.mubr.msk.f32.vlgmr.msra.gmra.mrb[2].mxu0 %vm110_vm2, %v545_v39 }
 0x387   :  { %v332_v40 = vpop.f32.mrb[2].mxu0 }
 0x388   :  { %v336_v42 = vmul.f32 %v332_v40, %v188_v32  ;;  %v491_v43 = vpop.f32.mrb[3].mxu0 }
 0x38a   :  { %v344_v45 = vmul.f32 %v372_v41, %v336_v42 }
 0x38c   :  { %v352_v46 = vadd.f32 %v373_v44, %v344_v45 }
 0x38e   :  { %353 = vst [vmem:[#allocation2] sm:$0xf] %v352_v46 }
 0x38f   :  { %557 = shalt.err (!%p554_p4)
}
 0x390   :  { %s558_s9 = scalar_lea.hbm %s703_s5, 64 }
 0x391   :  { %p559_p5 = scmp.ne.s32.totalorder %s703_s5, %s558_s9  ;;  %p562_p6 = scmp.lt.u32.totalorder %s558_s9, %s703_s5 }
 0x393   :  { %p564_p7 = pnand %p562_p6, %p559_p5 }
 0x395   :  { %567 = shalt.err (!%p564_p7)
}
 0x396   :  { %363 = dma.vmem_to_hbm [thread:$0]  %s361_s6, 64, %s703_s5, [#allocation3]  }
 0x397   :  { %568 = dma.done.wait [#allocation3], 64  }
 0x398   :  { %569 = vsyncadd [#allocation3], 4294967232 }
 0x399   :  { %367 = vsyncpa [#allocation3], 1 }

</bundles_post_ra>
